<compile_context>
chip_gen: v7x
topology: tpu7x:2x2x1
jax: 0.10.0
libtpu: 0.0.40
codegen_flags: <defaults>
</compile_context>

<pallas_src>
import jax
import jax.numpy as jnp
import numpy as np
from jax.experimental import pallas as pl
from jax.experimental.pallas import tpu as pltpu

_LANE_W = 512                    # lane-dense last dim for the flattened path
_SMALL_FALLBACK_ELEMS = 1 << 20  # below ~1M elements, let XLA fuse 2*x-1


def _tpu_block_budget():
    """Per-generation (block_bytes, vmem_limit_bytes) for the row tiling."""
    try:
        kind = jax.devices()[0].device_kind.lower()
    except Exception:
        kind = ""
    if "v6" in kind:
        # v6e: 128 MiB VMEM -> 8 MiB f32 blocks; in+out double-buffered = 32 MiB.
        return 8 << 20, 64 << 20
    if "v7" in kind or "7x" in kind:
        # v7x: 64 MiB VMEM per TC -> 4 MiB blocks; raise scoped limit explicitly.
        return 4 << 20, 48 << 20
    # v5e / unknown: 2 MiB blocks fit the 16 MiB default scoped-VMEM limit.
    return 2 << 20, None


def _pick_tile_rows(rows, lane_w, block_bytes, elem_bytes=4):
    """Row-tile: multiple of 8, within the byte budget, and >= ~4 grid steps."""
    if rows <= 8:
        return rows                                   # full second-minor dim: legal
    budget_rows = max(8, block_bytes // (lane_w * elem_bytes))
    quarter = pl.cdiv(rows, 4)                        # keep the pipeline >= 4 deep
    tile = min(budget_rows, max(8, quarter), rows)
    return max(8, (tile // 8) * 8)                    # ragged last block is legal


def _affine_kernel(x_ref, o_ref):
    # Elementwise o = 2*x - 1 on the VPU; cast folded in so bf16 inputs are read
    # from HBM at native width.
    o_ref[...] = 2.0 * x_ref[...].astype(jnp.float32) - 1.0


def _run_affine_2d(x2):
    rows, lane_w = x2.shape
    block_bytes, vmem_limit = _tpu_block_budget()
    tile_r = _pick_tile_rows(rows, lane_w, block_bytes)
    grid = (pl.cdiv(rows, tile_r),)

    params = dict(dimension_semantics=("parallel",))
    if vmem_limit is not None:
        params["vmem_limit_bytes"] = vmem_limit

    return pl.pallas_call(
        _affine_kernel,
        out_shape=jax.ShapeDtypeStruct((rows, lane_w), jnp.float32),
        grid=grid,
        in_specs=[pl.BlockSpec((tile_r, lane_w), lambda i: (i, 0))],
        out_specs=pl.BlockSpec((tile_r, lane_w), lambda i: (i, 0)),
        compiler_params=pltpu.CompilerParams(**params),
    )(x2)


def make_param(model_2d, force_pallas=None) -> jax.Array:
    """Replicates BaseModelInv.__init__: returns (2*model - 1) as (1,1,H,W) f32."""
    x = jnp.asarray(model_2d)
    if not jnp.issubdtype(x.dtype, jnp.floating):
        x = x.astype(jnp.float32)
    H, W = x.shape
    n = H * W

    use_pallas = force_pallas if force_pallas is not None else (n >= _SMALL_FALLBACK_ELEMS)

    if use_pallas and n % _LANE_W == 0:
        # Lane-dense 512-wide slab via a free contiguous reshape (no pad, no slice).
        y = _run_affine_2d(x.reshape(n // _LANE_W, _LANE_W))
        return y.reshape(1, 1, H, W)
    if use_pallas and W % 128 == 0:
        # Natural (H, W) layout already gives unmasked full-vreg stores.
        y = _run_affine_2d(x)
        return y.reshape(1, 1, H, W)

    # Tiny or layout-unfriendly shapes: plain jnp so XLA fuses the affine into the
    # consumer (per review, this is the right call for the production 16x16 case).
    return (2.0 * x.astype(jnp.float32) - 1.0).reshape(1, 1, H, W)


class BaseModelInvJax:
    """JAX/Pallas equivalent of the PyTorch BaseModelInv module."""

    def __init__(self, model_2d):
        self.model = make_param(model_2d)  # (1, 1, H, W) float32 "parameter"
        self.Bounds = {}

    def forward(self) -> jax.Array:
        # forward() just returns the parameter.
        return self.model


if __name__ == "__main__":
    key = jax.random.PRNGKey(0)

    # --- Case 1: canonical production shape (16x16, f32): small fallback path. ---
    H, W = 16, 16
    m_small = jax.random.uniform(key, (H, W), dtype=jnp.float32)
    net = BaseModelInvJax(m_small)
    out = jax.block_until_ready(net.forward())
    ref = (2.0 * np.asarray(m_small, dtype=np.float32) - 1.0).reshape(1, 1, H, W)
    assert out.shape == (1, 1, H, W) and out.dtype == jnp.float32
    np.testing.assert_allclose(np.asarray(out), ref, rtol=1e-6, atol=1e-6)

    # --- Case 2: 256x512 f32, Pallas forced: lane-dense flattened (rows, 512) path
    #             with a multi-step pipelined grid. ---
    k2 = jax.random.fold_in(key, 1)
    H2, W2 = 256, 512
    m_mid = jax.random.uniform(k2, (H2, W2), dtype=jnp.float32)
    out2 = jax.block_until_ready(make_param(m_mid, force_pallas=True))
    ref2 = (2.0 * np.asarray(m_mid, dtype=np.float32) - 1.0).reshape(1, 1, H2, W2)
    assert out2.shape == (1, 1, H2, W2) and out2.dtype == jnp.float32
    np.testing.assert_allclose(np.asarray(out2), ref2, rtol=1e-6, atol=1e-6)

    # --- Case 3: bf16 input, W % 128 == 0 but n % 512 != 0: natural-layout Pallas
    #             path with the in-kernel cast. ---
    k3 = jax.random.fold_in(key, 2)
    H3, W3 = 3, 128
    m_bf16 = jax.random.uniform(k3, (H3, W3), dtype=jnp.float32).astype(jnp.bfloat16)
    out3 = jax.block_until_ready(make_param(m_bf16, force_pallas=True))
    ref3 = (2.0 * np.asarray(m_bf16, dtype=np.float32) - 1.0).reshape(1, 1, H3, W3)
    assert out3.shape == (1, 1, H3, W3) and out3.dtype == jnp.float32
    np.testing.assert_allclose(np.asarray(out3), ref3, rtol=1e-6, atol=1e-6)

    # --- Case 4: odd small bf16 shape (50x30): fused jnp fallback (no pad/slice). ---
    k4 = jax.random.fold_in(key, 3)
    H4, W4 = 50, 30
    m_odd = jax.random.uniform(k4, (H4, W4), dtype=jnp.float32).astype(jnp.bfloat16)
    out4 = jax.block_until_ready(make_param(m_odd))
    ref4 = (2.0 * np.asarray(m_odd, dtype=np.float32) - 1.0).reshape(1, 1, H4, W4)
    assert out4.shape == (1, 1, H4, W4) and out4.dtype == jnp.float32
    np.testing.assert_allclose(np.asarray(out4), ref4, rtol=1e-6, atol=1e-6)

    print("KERNEL_OK")
</pallas_src>

<mosaic_0001>
module attributes {stable_mosaic.version = 11 : i64} {
  func.func @_affine_kernel(%arg0: i32, %arg1: memref<64x512xf32, #tpu.memory_space<vmem>>, %arg2: memref<64x512xf32, #tpu.memory_space<vmem>>) attributes {dimension_semantics = [#tpu.dimension_semantics<parallel>], iteration_bounds = array<i64: 4>, scalar_prefetch = 0 : i64, scratch_operands = 0 : i64, tpu.core_type = #tpu.core_type<tc>, window_params = [{transform_indices = @transform_0, window_bounds = array<i64: 64, 512>}, {transform_indices = @transform_1, window_bounds = array<i64: 64, 512>}]} {
    %c0 = arith.constant 0 : index
    %c0_0 = arith.constant 0 : index
    %0 = vector.load %arg1[%c0, %c0_0] : memref<64x512xf32, #tpu.memory_space<vmem>>, vector<64x512xf32>
    %cst = arith.constant 2.000000e+00 : f32
    %1 = vector.broadcast %cst : f32 to vector<64x512xf32>
    %2 = arith.mulf %1, %0 : vector<64x512xf32>
    %cst_1 = arith.constant 1.000000e+00 : f32
    %3 = vector.broadcast %cst_1 : f32 to vector<64x512xf32>
    %4 = arith.subf %2, %3 : vector<64x512xf32>
    %c0_2 = arith.constant 0 : index
    %c0_3 = arith.constant 0 : index
    %5 = vector.load %arg2[%c0_2, %c0_3] : memref<64x512xf32, #tpu.memory_space<vmem>>, vector<64x512xf32>
    tpu.vector_store %arg2[%c0_2, %c0_3], %4 {strides = array<i32>} : memref<64x512xf32, #tpu.memory_space<vmem>>, vector<64x512xf32>,
    return
  }
  func.func @transform_0(%arg0: i32) -> (i32, i32) {
    %c0_i32 = arith.constant 0 : i32
    %c0_i32_0 = arith.constant 0 : i32
    return %arg0, %c0_i32 : i32, i32
  }
  func.func @transform_1(%arg0: i32) -> (i32, i32) {
    %c0_i32 = arith.constant 0 : i32
    %c0_i32_0 = arith.constant 0 : i32
    return %arg0, %c0_i32 : i32, i32
  }
}

</mosaic_0001>

<bundles_post_ra>
// kernel: tpu_custom_call.1
= control target key start
LH: loop header
LB: loop body
LE: loop exit
PB: predicated region body
PF: predicated region fallthrough
CT: control target
= control target key end

     0   :  { %6 = vsyncpa [#allocation3], 0  ;;  %s805_s0 = inlined_call_operand.hbm [shape: f32[256,512], index: 0, kind: input, shape index: {}]   ;;  %s806_s1 = inlined_call_operand.hbm [shape: f32[256,512], index: 1, kind: output, shape index: {}]  }
   0x1   :  { %8 = vsyncpa [#allocation3 + $0x1], 0 }
   0x2   :  { %9 = vsyncpa [#allocation4], 0 }
   0x3   :  { %11 = vsyncpa [#allocation4 + $0x1], 0  ;;  %s570_s6 = smov 0   ;;  %s572_s7 = smov 0  }
   0x4   :  { %s574_s8 = smov 0   ;;  %s576_s9 = smov 0  }
   0x5 LB: > { %s591_s10 = sadd.s32 4294967295, %s552_s9   ;;  %s354_s11 = sadd.s32 4294967294, %s552_s9   ;;  %s552_s9 = sphi %s576_s9, %s818_s9   ;;  %s548_s8 = sphi %s574_s8, %s817_s8   ;;  %s544_s7 = sphi %s572_s7, %s816_s7   ;;  %s540_s6 = sphi %s570_s6, %s815_s6  }
   0x6   : > { %s595_s12 = sadd.s32 1, %s552_s9   ;;  %s24_s13 = sadd.s32 1, %s548_s8 }
   0x7   : > { %s21_s14 = ssub.s32 %s552_s9, %s595_s12  ;;  %p31_p0 = scmp.ne.s32.totalorder %s548_s8, %s544_s7 }
   0x8   : > { %p22_p1 = scmp.eq.s32.totalorder %s21_s14, 0  ;;  %p32_p2 = scmp.eq.s32.totalorder %s552_s9, 0 }
   0x9   : > { %p37_p3 = scmp.ne.s32.totalorder %s544_s7, %s540_s6  ;;  %p38_p4 = scmp.eq.s32.totalorder %s591_s10, 0 }
   0xa   : > { %s607_s15 = scalar_select %p22_p1, %s548_s8, %s24_s13  }
   0xb   : > { %p609_p5 = por %p32_p2, %p31_p0  ;;  %p613_p6 = por %p38_p4, %p37_p3 }
   0xc   : > { %p61_p7 = scmp.eq.s32.totalorder %s591_s10, 3  ;;  %p67_p8 = scmp.eq.s32.totalorder %s354_s11, 3 }
   0xd   : > { %p418_p9 = scmp.lt.s32.totalorder %s552_s9, 4  ;;  %s87_s20 = sand.u32 1, %s548_s8  }
   0xe   : > { %p619_p10 = por %p61_p7, %p31_p0  ;;  %p623_p11 = por %p67_p8, %p37_p3 }
   0xf   : > { %s403_s21 = sshll.u32 %s552_s9, 12  ;;  %s357_s22 = sshll.u32 %s87_s20, 8 }
  0x10   : > { %s810_s18 = scalar_select %p619_p10, 1, 0 }
  0x11   : > { %s811_s19 = scalar_select %p623_p11, 1, 0 }
  0x12   : > { %s632_s25 = scalar_lea.hbm %s805_s0, %s403_s21  ;;  %s91_s26 = scalar_lea.vmem [#allocation2], %s357_s22 }
  0x13   : > { %s99_s27 = sshll.u32 %s91_s26, 4  ;;  %p636_p12 = pnand %p418_p9, %p609_p5  ;;  %s640_s27 = int_to_ptr.vmem [resolvable:$true] %s99_s27 }
  0x14   : > { %s642_s29 = scalar_lea.sflag [#allocation3], %s87_s20  ;;  %s456_s30 = scalar_lea.hbm %s632_s25, 4096 }
  0x15   : > { %p457_p13 = scmp.ne.s32.totalorder %s632_s25, %s456_s30  ;;  %p458_p0 = pneg %p636_p12 }
  0x16   : > { %s461_s4 = scalar_lea.hbm %s805_s0, 16384  ;;  %p462_p3 = scmp.lt.u32.totalorder %s632_s25, %s805_s0 }
  0x17   : > { %p459_p1 = pnand %p458_p0, %p457_p13  ;;  %p463_p4 = scmp.lt.u32.totalorder %s461_s4, %s456_s30 }
  0x18   : > { %p465_p7 = scmp.lt.u32.totalorder %s456_s30, %s632_s25 }
  0x19   : > { %p460_p2 = pneg %p459_p1  ;;  %p464_p5 = por %p463_p4, %p462_p3 }
  0x1b   : > { %p466_p8 = por %p465_p7, %p464_p5 }
  0x1d   : > { %p467_p9 = pnand %p466_p8, %p460_p2 }
  0x1f   : > { %470 = shalt.err (!%p467_p9)
}
  0x20   : > { %s471_s13 = scalar_lea.vmem %s640_s27, 4096  ;;  %s554_s14 = smov [#allocation2]  }
  0x21   : > { %p472_p13 = scmp.ne.s32.totalorder %s640_s27, %s471_s13  ;;  %s476_s16 = sshll.u32 %s554_s14, 4  ;;  %s477_s16 = int_to_ptr.vmem [resolvable:$false] %s476_s16 }
  0x22   : > { %s478_s20 = scalar_lea.vmem %s477_s16, 8192  ;;  %p479_p10 = scmp.lt.s32.totalorder %s640_s27, %s477_s16 }
  0x23   : > { %p474_p1 = pnand %p472_p13, %p458_p0  ;;  %p480_p3 = scmp.lt.s32.totalorder %s478_s20, %s471_s13 }
  0x25   : > { %p475_p11 = pneg %p474_p1  ;;  %p481_p4 = por %p480_p3, %p479_p10 }
  0x27   : > { %p482_p5 = pnand %p481_p4, %p475_p11 }
  0x29   : > { %485 = shalt.err (!%p482_p5)
}
  0x2a   : > { %s555_s21 = smov 512   ;;  %s556_s22 = smov 32  }
  0x2b   : > { %413 = dma.hbm_to_vmem [thread:$0]  (!%p636_p12), %s632_s25, 4096, %s640_s27, %s642_s29, %s555_s21, %s555_s21, %s556_s22  }
  0x2c   : > { %p361_p0 = scmp.ge.s32.totalorder %s552_s9, 1  ;;  %p107_p2 = scmp.lt.s32.totalorder %s552_s9, 5 }
  0x2e   : > { %p108_p7 = pnand %p361_p0, %p107_p2 }
  0x2f   : > { %s673_s23 = sand.u32 (!%p108_p7), 1, %s544_s7  }
  0x30   : > { %111 = sbr.rel (%p108_p7) target bundleno = 100 (0x64), region = 24  ;;  %s362_s24 = sshll.u32 (!%p108_p7), %s673_s23, 8 }
  0x31   : > { %s114_s26 = scalar_lea.sflag (!%p108_p7), [#allocation3], %s673_s23  ;;  %s679_s30 = scalar_lea.vmem (!%p108_p7), [#allocation2], %s362_s24 }
  0x37   : > { %531 = dma.done.wait (%p613_p6), %s114_s26, 4096  }
  0x38   : > { %533 = vsyncadd (%p613_p6), %s114_s26, 4294963200  ;;  %v138_v0 = vld [vmem:[%s679_s30] sm:$0xff]  ;;  %v139_v1 = vld [vmem:[%s679_s30 + $0x8] sm:$0xff]  ;;  %s405_s25 = sshll.u32 %s591_s10, 12  ;;  %s701_s17 = scalar_lea.vmem [#allocation5], %s362_s24 }
  0x39   : > { %v140_v2 = vld [vmem:[%s679_s30 + $0x10] sm:$0xff]  ;;  %v170_v3 = vmul.f32 2.0, %v138_v0  ;;  %v171_v4 = vmul.f32 2.0, %v139_v1  ;;  %v141_v6 = vld [vmem:[%s679_s30 + $0x18] sm:$0xff]  ;;  %v142_v7 = vld [vmem:[%s679_s30 + $0x20] sm:$0xff]  ;;  %s281_s27 = sshll.u32 %s701_s17, 4  ;;  %s755_s2 = scalar_lea.hbm %s806_s1, %s405_s25  ;;  %s757_s27 = int_to_ptr.vmem [resolvable:$true] %s281_s27 }
  0x3a   : > { %v172_v5 = vmul.f32 2.0, %v140_v2  ;;  %v143_v8 = vld [vmem:[%s679_s30 + $0x28] sm:$0xff]  ;;  %v173_v9 = vmul.f32 2.0, %v141_v6  ;;  %v174_v10 = vmul.f32 2.0, %v142_v7  ;;  %v144_v12 = vld [vmem:[%s679_s30 + $0x30] sm:$0xff]  ;;  %v145_v13 = vld [vmem:[%s679_s30 + $0x38] sm:$0xff] }
  0x3b   : > { %v175_v11 = vmul.f32 2.0, %v143_v8  ;;  %v146_v14 = vld [vmem:[%s679_s30 + $0x40] sm:$0xff]  ;;  %v364_v15 = vadd.f32 -1.0, %v170_v3  ;;  %v365_v16 = vadd.f32 -1.0, %v171_v4  ;;  %v176_v18 = vmul.f32 2.0, %v144_v12  ;;  %v147_v19 = vld [vmem:[%s679_s30 + $0x48] sm:$0xff] }
  0x3c   : > { %v366_v17 = vadd.f32 -1.0, %v172_v5  ;;  %v148_v20 = vld [vmem:[%s679_s30 + $0x50] sm:$0xff]  ;;  %v367_v21 = vadd.f32 -1.0, %v173_v9  ;;  %v368_v22 = vadd.f32 -1.0, %v174_v10  ;;  %v177_v24 = vmul.f32 2.0, %v145_v13  ;;  %v149_v25 = vld [vmem:[%s679_s30 + $0x58] sm:$0xff] }
  0x3d   : > { %v369_v23 = vadd.f32 -1.0, %v175_v11  ;;  %v150_v26 = vld [vmem:[%s679_s30 + $0x60] sm:$0xff]  ;;  %234 = vst [vmem:[%s701_s17] sm:$0xff] %v364_v15  ;;  %235 = vst [vmem:[%s701_s17 + $0x8] sm:$0xff] %v365_v16  ;;  %v370_v27 = vadd.f32 -1.0, %v176_v18  ;;  %v178_v28 = vmul.f32 2.0, %v146_v14  ;;  %v179_v29 = vmul.f32 2.0, %v147_v19 }
  0x3e   : > { %236 = vst [vmem:[%s701_s17 + $0x10] sm:$0xff] %v366_v17  ;;  %v180_v30 = vmul.f32 2.0, %v148_v20  ;;  %v151_v31 = vld [vmem:[%s679_s30 + $0x68] sm:$0xff]  ;;  %v152_v32 = vld [vmem:[%s679_s30 + $0x70] sm:$0xff]  ;;  %237 = vst [vmem:[%s701_s17 + $0x18] sm:$0xff] %v367_v21  ;;  %v371_v33 = vadd.f32 -1.0, %v177_v24 }
  0x3f   : > { %238 = vst [vmem:[%s701_s17 + $0x20] sm:$0xff] %v368_v22  ;;  %239 = vst [vmem:[%s701_s17 + $0x28] sm:$0xff] %v369_v23  ;;  %v181_v34 = vmul.f32 2.0, %v149_v25  ;;  %v182_v35 = vmul.f32 2.0, %v150_v26  ;;  %v183_v36 = vmul.f32 2.0, %v151_v31  ;;  %v153_v37 = vld [vmem:[%s679_s30 + $0x78] sm:$0xff] }
  0x40   : > { %v154_v38 = vld [vmem:[%s679_s30 + $0x80] sm:$0xff]  ;;  %240 = vst [vmem:[%s701_s17 + $0x30] sm:$0xff] %v370_v27  ;;  %v372_v39 = vadd.f32 -1.0, %v178_v28  ;;  %v373_v40 = vadd.f32 -1.0, %v179_v29  ;;  %v374_v41 = vadd.f32 -1.0, %v180_v30  ;;  %v184_v42 = vmul.f32 2.0, %v152_v32 }
  0x41   : > { %v155_v43 = vld [vmem:[%s679_s30 + $0x88] sm:$0xff]  ;;  %v156_v44 = vld [vmem:[%s679_s30 + $0x90] sm:$0xff]  ;;  %241 = vst [vmem:[%s701_s17 + $0x38] sm:$0xff] %v371_v33  ;;  %v375_v45 = vadd.f32 -1.0, %v181_v34  ;;  %v376_v46 = vadd.f32 -1.0, %v182_v35  ;;  %v377_v47 = vadd.f32 -1.0, %v183_v36 }
  0x42   : > { %v185_v48 = vmul.f32 2.0, %v153_v37  ;;  %v157_v49 = vld [vmem:[%s679_s30 + $0x98] sm:$0xff]  ;;  %v158_v50 = vld [vmem:[%s679_s30 + $0xa0] sm:$0xff]  ;;  %242 = vst [vmem:[%s701_s17 + $0x40] sm:$0xff] %v372_v39  ;;  %243 = vst [vmem:[%s701_s17 + $0x48] sm:$0xff] %v373_v40  ;;  %v378_v51 = vadd.f32 -1.0, %v184_v42 }
  0x43   : > { %244 = vst [vmem:[%s701_s17 + $0x50] sm:$0xff] %v374_v41  ;;  %v186_v52 = vmul.f32 2.0, %v154_v38  ;;  %v187_v53 = vmul.f32 2.0, %v155_v43  ;;  %v188_v54 = vmul.f32 2.0, %v156_v44  ;;  %v159_v55 = vld [vmem:[%s679_s30 + $0xa8] sm:$0xff]  ;;  %v160_v56 = vld [vmem:[%s679_s30 + $0xb0] sm:$0xff] }
  0x44   : > { %245 = vst [vmem:[%s701_s17 + $0x58] sm:$0xff] %v375_v45  ;;  %246 = vst [vmem:[%s701_s17 + $0x60] sm:$0xff] %v376_v46  ;;  %v379_v57 = vadd.f32 -1.0, %v185_v48  ;;  %v189_v58 = vmul.f32 2.0, %v157_v49  ;;  %v190_v59 = vmul.f32 2.0, %v158_v50  ;;  %v191_v60 = vmul.f32 2.0, %v159_v55 }
  0x45   : > { %247 = vst [vmem:[%s701_s17 + $0x68] sm:$0xff] %v377_v47  ;;  %v161_v61 = vld [vmem:[%s679_s30 + $0xb8] sm:$0xff]  ;;  %v162_v62 = vld [vmem:[%s679_s30 + $0xc0] sm:$0xff]  ;;  %248 = vst [vmem:[%s701_s17 + $0x70] sm:$0xff] %v378_v51  ;;  %v380_v63 = vadd.f32 -1.0, %v186_v52  ;;  %v381_v0 = vadd.f32 -1.0, %v187_v53 }
  0x46   : > { %v382_v1 = vadd.f32 -1.0, %v188_v54  ;;  %v192_v2 = vmul.f32 2.0, %v160_v56  ;;  %v163_v3 = vld [vmem:[%s679_s30 + $0xc8] sm:$0xff]  ;;  %v164_v4 = vld [vmem:[%s679_s30 + $0xd0] sm:$0xff]  ;;  %249 = vst [vmem:[%s701_s17 + $0x78] sm:$0xff] %v379_v57  ;;  %v383_v5 = vadd.f32 -1.0, %v189_v58 }
  0x47   : > { %v384_v6 = vadd.f32 -1.0, %v190_v59  ;;  %v385_v7 = vadd.f32 -1.0, %v191_v60  ;;  %v193_v8 = vmul.f32 2.0, %v161_v61  ;;  %v165_v9 = vld [vmem:[%s679_s30 + $0xd8] sm:$0xff]  ;;  %v166_v10 = vld [vmem:[%s679_s30 + $0xe0] sm:$0xff]  ;;  %250 = vst [vmem:[%s701_s17 + $0x80] sm:$0xff] %v380_v63 }
  0x48   : > { %251 = vst [vmem:[%s701_s17 + $0x88] sm:$0xff] %v381_v0  ;;  %252 = vst [vmem:[%s701_s17 + $0x90] sm:$0xff] %v382_v1  ;;  %v386_v11 = vadd.f32 -1.0, %v192_v2  ;;  %v194_v12 = vmul.f32 2.0, %v162_v62  ;;  %v195_v13 = vmul.f32 2.0, %v163_v3  ;;  %v196_v14 = vmul.f32 2.0, %v164_v4 }
  0x49   : > { %v167_v15 = vld [vmem:[%s679_s30 + $0xe8] sm:$0xff]  ;;  %v168_v16 = vld [vmem:[%s679_s30 + $0xf0] sm:$0xff]  ;;  %253 = vst [vmem:[%s701_s17 + $0x98] sm:$0xff] %v383_v5  ;;  %254 = vst [vmem:[%s701_s17 + $0xa0] sm:$0xff] %v384_v6  ;;  %v387_v17 = vadd.f32 -1.0, %v193_v8  ;;  %v197_v18 = vmul.f32 2.0, %v165_v9 }
  0x4a   : > { %255 = vst [vmem:[%s701_s17 + $0xa8] sm:$0xff] %v385_v7  ;;  %v198_v19 = vmul.f32 2.0, %v166_v10  ;;  %v199_v20 = vmul.f32 2.0, %v167_v15  ;;  %v169_v21 = vld [vmem:[%s679_s30 + $0xf8] sm:$0xff]  ;;  %256 = vst [vmem:[%s701_s17 + $0xb0] sm:$0xff] %v386_v11  ;;  %v388_v22 = vadd.f32 -1.0, %v194_v12 }
  0x4b   : > { %v389_v23 = vadd.f32 -1.0, %v195_v13  ;;  %v390_v24 = vadd.f32 -1.0, %v196_v14  ;;  %v200_v25 = vmul.f32 2.0, %v168_v16  ;;  %257 = vst [vmem:[%s701_s17 + $0xb8] sm:$0xff] %v387_v17  ;;  %v391_v26 = vadd.f32 -1.0, %v197_v18  ;;  %s267_s3 = scalar_lea.sflag [#allocation4], %s673_s23 }
  0x4c   : > { %v392_v27 = vadd.f32 -1.0, %v198_v19  ;;  %v393_v28 = vadd.f32 -1.0, %v199_v20  ;;  %v201_v29 = vmul.f32 2.0, %v169_v21  ;;  %258 = vst [vmem:[%s701_s17 + $0xc0] sm:$0xff] %v388_v22  ;;  %s486_s4 = scalar_lea.vmem %s757_s27, 4096  ;;  %p813_p10 = scmp.ne.s32.totalorder %s810_s18, 0 }
  0x4d   : > { %259 = vst [vmem:[%s701_s17 + $0xc8] sm:$0xff] %v389_v23  ;;  %260 = vst [vmem:[%s701_s17 + $0xd0] sm:$0xff] %v390_v24  ;;  %v394_v30 = vadd.f32 -1.0, %v200_v25  ;;  %p487_p6 = scmp.ne.s32.totalorder %s757_s27, %s486_s4  ;;  %s557_s10 = smov [#allocation5]  }
  0x4e   : > { %261 = vst [vmem:[%s701_s17 + $0xd8] sm:$0xff] %v391_v26  ;;  %262 = vst [vmem:[%s701_s17 + $0xe0] sm:$0xff] %v392_v27  ;;  %v395_v31 = vadd.f32 -1.0, %v201_v29  ;;  %s490_s5 = sshll.u32 %s557_s10, 4  ;;  %s491_s5 = int_to_ptr.vmem [resolvable:$false] %s490_s5 }
  0x4f   : > { %263 = vst [vmem:[%s701_s17 + $0xe8] sm:$0xff] %v393_v28  ;;  %264 = vst [vmem:[%s701_s17 + $0xf0] sm:$0xff] %v394_v30  ;;  %p488_p11 = pnand %p487_p6, %p813_p10  ;;  %s492_s11 = scalar_lea.vmem %s491_s5, 8192 }
  0x50   : > { %265 = vst [vmem:[%s701_s17 + $0xf8] sm:$0xff] %v395_v31  ;;  %p493_p8 = scmp.lt.s32.totalorder %s757_s27, %s491_s5  ;;  %p494_p9 = scmp.lt.s32.totalorder %s492_s11, %s486_s4 }
  0x51   : > { %p489_p12 = pneg %p488_p11 }
  0x52   : > { %p495_p13 = por %p494_p9, %p493_p8 }
  0x54   : > { %p496_p1 = pnand %p495_p13, %p489_p12 }
  0x56   : > { %499 = shalt.err (!%p496_p1)
}
  0x57   : > { %s500_s13 = scalar_lea.hbm %s755_s2, 4096  ;;  %s504_s20 = scalar_lea.hbm %s806_s1, 16384 }
  0x58   : > { %p501_p3 = scmp.ne.s32.totalorder %s755_s2, %s500_s13  ;;  %p505_p0 = scmp.lt.u32.totalorder %s755_s2, %s806_s1 }
  0x59   : > { %p506_p2 = scmp.lt.u32.totalorder %s504_s20, %s500_s13  ;;  %p508_p6 = scmp.lt.u32.totalorder %s500_s13, %s755_s2 }
  0x5a   : > { %p502_p4 = pnand %p501_p3, %p813_p10 }
  0x5b   : > { %p507_p7 = por %p506_p2, %p505_p0 }
  0x5c   : > { %p503_p5 = pneg %p502_p4 }
  0x5d   : > { %p509_p11 = por %p508_p6, %p507_p7 }
  0x5f   : > { %p510_p12 = pnand %p509_p11, %p503_p5 }
  0x61   : > { %513 = shalt.err (!%p510_p12)
}
  0x62   : > { %s558_s24 = smov 512   ;;  %s559_s26 = smov 32  }
  0x63   : > { %408 = dma.vmem_to_hbm [thread:$0]  (%p813_p10), %s757_s27, 4096, %s755_s2, %s267_s3, %s558_s24, %s558_s24, %s559_s26  }
  0x64 PF: > { %p419_p8 = scmp.ge.s32.totalorder %s552_s9, 2  ;;  %s296_s30 = sand.u32 1, %s540_s6  }
  0x65   : > { %p814_p9 = scmp.ne.s32.totalorder %s811_s19, 0  ;;  %s297_s25 = scalar_lea.sflag [#allocation4], %s296_s30 }
  0x67   : > { %p415_p13 = pnand %p419_p8, %p814_p9 }
  0x69   : > { %535 = dma.done.wait (!%p415_p13), %s297_s25, 4096  }
  0x6a   : > { %537 = vsyncadd (!%p415_p13), %s297_s25, 4294963200  ;;  %p14_p1 = scmp.ge.s32.totalorder %s595_s12, 6   ;;  %s815_s6 = smov %s544_s7 }
  0x6b   : > { %s816_s7 = smov %s548_s8  ;;  %s817_s8 = smov %s607_s15 }
  0x6c   : > { %s818_s9 = smov %s595_s12  ;;  %16 = sbr.rel (!%p14_p1) target bundleno = 5 (0x5), region = 69 }
  0x73   :  { %302 = vsyncpa [#allocation3], 1 }
  0x74   :  { %304 = vsyncpa [#allocation3 + $0x1], 1 }
  0x75   :  { %305 = vsyncpa [#allocation4], 1 }
  0x76   :  { %307 = vsyncpa [#allocation4 + $0x1], 1 }

</bundles_post_ra>
